<compile_context>
chip_gen: v7x
topology: tpu7x:2x2x1
jax: 0.10.0
libtpu: 0.0.40
codegen_flags: <defaults>
</compile_context>

<pallas_src>
import jax
import jax.numpy as jnp
from jax.experimental import pallas as pl
from jax.experimental.pallas import tpu as pltpu


SOFTPLUS_BETA = 20.0
SOFTPLUS_INV_BETA = 1.0 / SOFTPLUS_BETA
SOFTPLUS_THRESHOLD = 20.0   # PyTorch nn.Softplus default threshold
DEFAULT_TILE_B = 2048       # batch rows per grid step (clamped/aligned below)
USE_BF16_TRANSPORT = True   # bf16 x/weights transport + MXU operands, f32 accum


def _round_up(x, m):
    return (x + m - 1) // m * m


def _softplus_beta(h):
    """PyTorch Softplus(beta=20): (1/beta)*log1p(exp(beta*x)), identity past threshold."""
    bz = SOFTPLUS_BETA * h
    e = jnp.exp(jnp.minimum(bz, SOFTPLUS_THRESHOLD))   # clamp: unselected branch stays finite
    return jnp.where(bz > SOFTPLUS_THRESHOLD, h, jnp.log1p(e) * SOFTPLUS_INV_BETA)


def _make_fcnet_kernel(n_layers):
    """Fused MLP kernel over one (tile_b, xdim_in) batch tile.

    Ref signature: (x_ref, w0_ref, b0_ref, w1_ref, b1_ref, ..., o_ref).
    Softplus(beta=20) follows every layer except the last (matches build_layers).
    """

    def kernel(*refs):
        x_ref = refs[0]
        o_ref = refs[-1]
        param_refs = refs[1:-1]

        h = x_ref[...]                      # transport dtype (bf16 or f32)
        for i in range(n_layers):           # unrolled on purpose (see header)
            w = param_refs[2 * i][...]      # resident weight, transport dtype
            b = param_refs[2 * i + 1][...]  # resident bias, f32
            # Cast activations to the weight dtype for the MXU (no-op on the
            # first layer / in full-f32 mode); accumulate in f32.
            h = jnp.dot(h.astype(w.dtype), w, preferred_element_type=jnp.float32)
            h = h + b                       # f32 bias add
            if i != n_layers - 1:
                h = _softplus_beta(h)       # f32 elementwise
        o_ref[...] = h.astype(o_ref.dtype)

    return kernel


def fcnet_forward(x, t, params, *, tile_b=DEFAULT_TILE_B,
                  use_bf16=USE_BF16_TRANSPORT, out_dtype=jnp.float32):
    """Pallas-fused forward of FCnet.  `t` is unused (matches PyTorch)."""
    del t  # FCnet.forward ignores t
    batch, xdim_in = x.shape
    n_layers = len(params)
    xdim_out = params[-1][0].shape[1]

    compute_dtype = jnp.bfloat16 if use_bf16 else jnp.float32
    b_align = 16 if use_bf16 else 8         # sublane granularity of the transport dtype

    # --- batch tiling: tile_b multiple of b_align; keep >=2 tiles when possible
    # (v7x has 2 TensorCores; neutral on single-TC v5e/v6e) ------------------
    tile_b = max(b_align, _round_up(int(tile_b), b_align))
    batch_r = _round_up(max(batch, 1), b_align)
    if batch_r >= 2 * b_align:
        half = max((batch_r // 2) // b_align * b_align, b_align)
        tile_b = min(tile_b, half)
    else:
        tile_b = min(tile_b, batch_r)
    batch_p = _round_up(batch_r, tile_b)

    # Only the batch dim is padded (zero rows, sliced off below).  Feature dims
    # stay at true width -> no HBM amplification on the x / out streams.
    x_p = jnp.zeros((batch_p, xdim_in), compute_dtype).at[:batch, :].set(
        x.astype(compute_dtype))

    flat_params = []
    in_specs = [pl.BlockSpec((tile_b, xdim_in), lambda i: (i, 0))]
    for w, b in params:
        d_in, d_out = w.shape
        w_c = jnp.asarray(w, compute_dtype)                 # pre-cast: no per-step VPU cast
        b_c = jnp.asarray(b, jnp.float32).reshape(1, d_out)  # bias stays f32 (tiny, precise)
        flat_params += [w_c, b_c]
        # Whole-array resident parameters: constant index maps, no per-step DMA.
        in_specs += [pl.BlockSpec((d_in, d_out), lambda i: (0, 0)),
                     pl.BlockSpec((1, d_out), lambda i: (0, 0))]

    kernel = _make_fcnet_kernel(n_layers)
    grid = (batch_p // tile_b,)

    out = pl.pallas_call(
        kernel,
        out_shape=jax.ShapeDtypeStruct((batch_p, xdim_out), out_dtype),
        grid=grid,
        in_specs=in_specs,
        out_specs=pl.BlockSpec((tile_b, xdim_out), lambda i: (i, 0)),
        compiler_params=pltpu.CompilerParams(
            dimension_semantics=("parallel",),      # megacore sharding on v7x
            vmem_limit_bytes=32 * 1024 * 1024,      # ample headroom, safe on v7x 64 MiB
        ),
    )(x_p, *flat_params)

    return out[:batch, :]


def init_fcnet_params(key, xdim_flow, hid_dims):
    """Deterministic init mimicking nn.Linear default (U[-1/sqrt(in), 1/sqrt(in)]).

    Weights stored PRE-TRANSPOSED as (in_dim, out_dim) so the kernel computes
    h = h @ W + b on the MXU; biases as (1, out_dim) for clean 2-D broadcast.
    """
    dims_in = (xdim_flow,) + tuple(hid_dims)
    dims_out = tuple(hid_dims) + (xdim_flow,)
    params = []
    for d_in, d_out in zip(dims_in, dims_out):
        key, kw, kb = jax.random.split(key, 3)
        bound = 1.0 / (d_in ** 0.5)
        w = jax.random.uniform(kw, (d_in, d_out), jnp.float32, -bound, bound)
        b = jax.random.uniform(kb, (1, d_out), jnp.float32, -bound, bound)
        params.append((w, b))
    return params


def fcnet_reference(x, params, *, use_bf16=USE_BF16_TRANSPORT):
    """Pure-JAX reference mirroring the kernel math (same transport/dot policy)."""
    cd = jnp.bfloat16 if use_bf16 else jnp.float32
    h = x.astype(cd)
    n = len(params)
    for i, (w, b) in enumerate(params):
        h = jnp.dot(h.astype(cd), jnp.asarray(w, cd),
                    preferred_element_type=jnp.float32)
        h = h + jnp.asarray(b, jnp.float32).reshape(1, -1)
        if i != n - 1:
            h = _softplus_beta(h)
    return h


if __name__ == "__main__":
    # config.Xdim_flow = 8, config.hid_dims = "32-32"
    XDIM_FLOW = 8
    HID_DIMS = (32, 32)
    BATCH = 4

    key = jax.random.PRNGKey(0)
    key, kx = jax.random.split(key)
    x = jax.random.normal(kx, (BATCH, XDIM_FLOW), jnp.float32)
    t = jnp.zeros((BATCH, 1), jnp.float32)  # unused, as in FCnet.forward

    params = init_fcnet_params(key, XDIM_FLOW, HID_DIMS)

    # Default path: bf16 transport/MXU, f32 accumulation + elementwise.
    out_bf16 = jax.block_until_ready(fcnet_forward(x, t, params, use_bf16=True))
    ref_bf16 = fcnet_reference(x, params, use_bf16=True)
    assert out_bf16.shape == (BATCH, XDIM_FLOW)
    assert jnp.allclose(out_bf16, ref_bf16, atol=1e-4, rtol=1e-4), \
        f"bf16 path: max abs err {jnp.max(jnp.abs(out_bf16 - ref_bf16))}"

    # Full-f32 path (exact match to the PyTorch module's numerics).
    out_f32 = jax.block_until_ready(fcnet_forward(x, t, params, use_bf16=False))
    ref_f32 = fcnet_reference(x, params, use_bf16=False)
    assert out_f32.shape == (BATCH, XDIM_FLOW)
    assert jnp.allclose(out_f32, ref_f32, atol=1e-5, rtol=1e-5), \
        f"f32 path: max abs err {jnp.max(jnp.abs(out_f32 - ref_f32))}"

    # Multi-tile grid exercise (>= 2 tiles -> both v7x TensorCores used).
    BATCH_L = 300
    key, kxl = jax.random.split(key)
    x_l = jax.random.normal(kxl, (BATCH_L, XDIM_FLOW), jnp.float32)
    out_l = jax.block_until_ready(fcnet_forward(x_l, None, params, use_bf16=True))
    ref_l = fcnet_reference(x_l, params, use_bf16=True)
    assert out_l.shape == (BATCH_L, XDIM_FLOW)
    assert jnp.allclose(out_l, ref_l, atol=1e-4, rtol=1e-4), \
        f"multi-tile path: max abs err {jnp.max(jnp.abs(out_l - ref_l))}"

    print("KERNEL_OK")
</pallas_src>

<mosaic_0001>
module attributes {stable_mosaic.version = 11 : i64} {
  func.func @kernel(%arg0: i32, %arg1: memref<16x8xbf16, #tpu.memory_space<vmem>>, %arg2: memref<8x32xbf16, #tpu.memory_space<vmem>>, %arg3: memref<1x32xf32, #tpu.memory_space<vmem>>, %arg4: memref<32x32xbf16, #tpu.memory_space<vmem>>, %arg5: memref<1x32xf32, #tpu.memory_space<vmem>>, %arg6: memref<32x8xbf16, #tpu.memory_space<vmem>>, %arg7: memref<1x8xf32, #tpu.memory_space<vmem>>, %arg8: memref<16x8xf32, #tpu.memory_space<vmem>>) attributes {dimension_semantics = [#tpu.dimension_semantics<parallel>], iteration_bounds = array<i64: 1>, scalar_prefetch = 0 : i64, scratch_operands = 0 : i64, tpu.core_type = #tpu.core_type<tc>, window_params = [{transform_indices = @transform_0, window_bounds = array<i64: 16, 8>}, {pipeline_mode = #tpu.pipeline_mode<synchronous>, transform_indices = @transform_1, window_bounds = array<i64: 8, 32>}, {pipeline_mode = #tpu.pipeline_mode<synchronous>, transform_indices = @transform_2, window_bounds = array<i64: 1, 32>}, {pipeline_mode = #tpu.pipeline_mode<synchronous>, transform_indices = @transform_3, window_bounds = array<i64: 32, 32>}, {pipeline_mode = #tpu.pipeline_mode<synchronous>, transform_indices = @transform_4, window_bounds = array<i64: 1, 32>}, {pipeline_mode = #tpu.pipeline_mode<synchronous>, transform_indices = @transform_5, window_bounds = array<i64: 32, 8>}, {pipeline_mode = #tpu.pipeline_mode<synchronous>, transform_indices = @transform_6, window_bounds = array<i64: 1, 8>}, {transform_indices = @transform_7, window_bounds = array<i64: 16, 8>}]} {
    %c0 = arith.constant 0 : index
    %c0_0 = arith.constant 0 : index
    %0 = vector.load %arg1[%c0, %c0_0] : memref<16x8xbf16, #tpu.memory_space<vmem>>, vector<16x8xbf16>
    %c0_1 = arith.constant 0 : index
    %c0_2 = arith.constant 0 : index
    %1 = vector.load %arg2[%c0_1, %c0_2] : memref<8x32xbf16, #tpu.memory_space<vmem>>, vector<8x32xbf16>
    %c0_3 = arith.constant 0 : index
    %c0_4 = arith.constant 0 : index
    %2 = vector.load %arg3[%c0_3, %c0_4] : memref<1x32xf32, #tpu.memory_space<vmem>>, vector<1x32xf32>
    %cst = arith.constant dense<0.000000e+00> : vector<16x32xf32>
    %3 = tpu.matmul %0, %1, %cst {dimension_numbers = #tpu.dot_dimension_numbers<[1], [0], [0], [1], [0, 0, 1, 1], [], []>} : vector<16x8xbf16>, vector<8x32xbf16>, vector<16x32xf32> -> vector<16x32xf32>
    %4 = vector.broadcast %2 : vector<1x32xf32> to vector<16x32xf32>
    %5 = arith.addf %3, %4 : vector<16x32xf32>
    %cst_5 = arith.constant 2.000000e+01 : f32
    %6 = vector.broadcast %cst_5 : f32 to vector<16x32xf32>
    %7 = arith.mulf %6, %5 : vector<16x32xf32>
    %cst_6 = arith.constant 2.000000e+01 : f32
    %8 = vector.broadcast %cst_6 : f32 to vector<16x32xf32>
    %9 = arith.minimumf %7, %8 : vector<16x32xf32>
    %10 = math.exp %9 : vector<16x32xf32>
    %cst_7 = arith.constant 2.000000e+01 : f32
    %11 = vector.broadcast %cst_7 : f32 to vector<16x32xf32>
    %12 = arith.cmpf ogt, %7, %11 : vector<16x32xf32>
    %13 = math.log1p %10 : vector<16x32xf32>
    %cst_8 = arith.constant 5.000000e-02 : f32
    %14 = vector.broadcast %cst_8 : f32 to vector<16x32xf32>
    %15 = arith.mulf %13, %14 : vector<16x32xf32>
    %16 = arith.select %12, %5, %15 : vector<16x32xi1>, vector<16x32xf32>
    %c0_9 = arith.constant 0 : index
    %c0_10 = arith.constant 0 : index
    %17 = vector.load %arg4[%c0_9, %c0_10] : memref<32x32xbf16, #tpu.memory_space<vmem>>, vector<32x32xbf16>
    %c0_11 = arith.constant 0 : index
    %c0_12 = arith.constant 0 : index
    %18 = vector.load %arg5[%c0_11, %c0_12] : memref<1x32xf32, #tpu.memory_space<vmem>>, vector<1x32xf32>
    %19 = arith.truncf %16 : vector<16x32xf32> to vector<16x32xbf16>
    %cst_13 = arith.constant dense<0.000000e+00> : vector<16x32xf32>
    %20 = tpu.matmul %19, %17, %cst_13 {dimension_numbers = #tpu.dot_dimension_numbers<[1], [0], [0], [1], [0, 0, 1, 1], [], []>} : vector<16x32xbf16>, vector<32x32xbf16>, vector<16x32xf32> -> vector<16x32xf32>
    %21 = vector.broadcast %18 : vector<1x32xf32> to vector<16x32xf32>
    %22 = arith.addf %20, %21 : vector<16x32xf32>
    %cst_14 = arith.constant 2.000000e+01 : f32
    %23 = vector.broadcast %cst_14 : f32 to vector<16x32xf32>
    %24 = arith.mulf %23, %22 : vector<16x32xf32>
    %cst_15 = arith.constant 2.000000e+01 : f32
    %25 = vector.broadcast %cst_15 : f32 to vector<16x32xf32>
    %26 = arith.minimumf %24, %25 : vector<16x32xf32>
    %27 = math.exp %26 : vector<16x32xf32>
    %cst_16 = arith.constant 2.000000e+01 : f32
    %28 = vector.broadcast %cst_16 : f32 to vector<16x32xf32>
    %29 = arith.cmpf ogt, %24, %28 : vector<16x32xf32>
    %30 = math.log1p %27 : vector<16x32xf32>
    %cst_17 = arith.constant 5.000000e-02 : f32
    %31 = vector.broadcast %cst_17 : f32 to vector<16x32xf32>
    %32 = arith.mulf %30, %31 : vector<16x32xf32>
    %33 = arith.select %29, %22, %32 : vector<16x32xi1>, vector<16x32xf32>
    %c0_18 = arith.constant 0 : index
    %c0_19 = arith.constant 0 : index
    %34 = vector.load %arg6[%c0_18, %c0_19] : memref<32x8xbf16, #tpu.memory_space<vmem>>, vector<32x8xbf16>
    %c0_20 = arith.constant 0 : index
    %c0_21 = arith.constant 0 : index
    %35 = vector.load %arg7[%c0_20, %c0_21] : memref<1x8xf32, #tpu.memory_space<vmem>>, vector<1x8xf32>
    %36 = arith.truncf %33 : vector<16x32xf32> to vector<16x32xbf16>
    %cst_22 = arith.constant dense<0.000000e+00> : vector<16x8xf32>
    %37 = tpu.matmul %36, %34, %cst_22 {dimension_numbers = #tpu.dot_dimension_numbers<[1], [0], [0], [1], [0, 0, 1, 1], [], []>} : vector<16x32xbf16>, vector<32x8xbf16>, vector<16x8xf32> -> vector<16x8xf32>
    %38 = vector.broadcast %35 : vector<1x8xf32> to vector<16x8xf32>
    %39 = arith.addf %37, %38 : vector<16x8xf32>
    %c0_23 = arith.constant 0 : index
    %c0_24 = arith.constant 0 : index
    %40 = vector.load %arg8[%c0_23, %c0_24] : memref<16x8xf32, #tpu.memory_space<vmem>>, vector<16x8xf32>
    tpu.vector_store %arg8[%c0_23, %c0_24], %39 {strides = array<i32>} : memref<16x8xf32, #tpu.memory_space<vmem>>, vector<16x8xf32>,
    return
  }
  func.func @transform_0(%arg0: i32) -> (i32, i32) {
    %c0_i32 = arith.constant 0 : i32
    %c0_i32_0 = arith.constant 0 : i32
    return %arg0, %c0_i32 : i32, i32
  }
  func.func @transform_1(%arg0: i32) -> (i32, i32) {
    %c0_i32 = arith.constant 0 : i32
    %c0_i32_0 = arith.constant 0 : i32
    %c0_i32_1 = arith.constant 0 : i32
    return %c0_i32, %c0_i32_0 : i32, i32
  }
  func.func @transform_2(%arg0: i32) -> (i32, i32) {
    %c0_i32 = arith.constant 0 : i32
    %c0_i32_0 = arith.constant 0 : i32
    %c0_i32_1 = arith.constant 0 : i32
    return %c0_i32, %c0_i32_0 : i32, i32
  }
  func.func @transform_3(%arg0: i32) -> (i32, i32) {
    %c0_i32 = arith.constant 0 : i32
    %c0_i32_0 = arith.constant 0 : i32
    %c0_i32_1 = arith.constant 0 : i32
    return %c0_i32, %c0_i32_0 : i32, i32
  }
  func.func @transform_4(%arg0: i32) -> (i32, i32) {
    %c0_i32 = arith.constant 0 : i32
    %c0_i32_0 = arith.constant 0 : i32
    %c0_i32_1 = arith.constant 0 : i32
    return %c0_i32, %c0_i32_0 : i32, i32
  }
  func.func @transform_5(%arg0: i32) -> (i32, i32) {
    %c0_i32 = arith.constant 0 : i32
    %c0_i32_0 = arith.constant 0 : i32
    %c0_i32_1 = arith.constant 0 : i32
    return %c0_i32, %c0_i32_0 : i32, i32
  }
  func.func @transform_6(%arg0: i32) -> (i32, i32) {
    %c0_i32 = arith.constant 0 : i32
    %c0_i32_0 = arith.constant 0 : i32
    %c0_i32_1 = arith.constant 0 : i32
    return %c0_i32, %c0_i32_0 : i32, i32
  }
  func.func @transform_7(%arg0: i32) -> (i32, i32) {
    %c0_i32 = arith.constant 0 : i32
    %c0_i32_0 = arith.constant 0 : i32
    return %arg0, %c0_i32 : i32, i32
  }
}

</mosaic_0001>

<bundles_post_ra>
// kernel: tpu_custom_call.1
= control target key start
LH: loop header
LB: loop body
LE: loop exit
PB: predicated region body
PF: predicated region fallthrough
CT: control target
= control target key end

     0   :  { %vm46_vm0 = vcmask 1043456   ;;  %v362_v0 = vmov 0.0   ;;  %vm363_vm1 = vmmov 0   ;;  %vm42_vm2 = vcmask 64512   ;;  %s450_s1 = inlined_call_operand.vmem [shape: bf16[8,32], index: 1, kind: input, shape index: {}]   ;;  %s451_s0 = inlined_call_operand.vmem [shape: bf16[16,8], index: 0, kind: input, shape index: {}]   ;;  %s452_s3 = inlined_call_operand.vmem [shape: bf16[32,32], index: 3, kind: input, shape index: {}]   ;;  %s453_s2 = inlined_call_operand.vmem [shape: f32[1,32], index: 2, kind: input, shape index: {}]   ;;  %s454_s5 = inlined_call_operand.vmem [shape: bf16[32,8], index: 5, kind: input, shape index: {}]   ;;  %s455_s4 = inlined_call_operand.vmem [shape: f32[1,32], index: 4, kind: input, shape index: {}]   ;;  %s456_s6 = inlined_call_operand.vmem [shape: f32[1,8], index: 6, kind: input, shape index: {}]   ;;  %s457_s7 = inlined_call_operand.vmem [shape: f32[16,8], index: 7, kind: output, shape index: {}]  }
   0x1   :  { %317 = vmatprep.subr.bf16.mxu0 %v362_v0  ;;  %v29_v1 = vld [vmem:[%s450_s1] sm:$0xf]  ;;  %319 = vmatprep.mubr.msk.bf16.mxu0 %vm363_vm1, %v362_v0  ;;  %v343_v5 = vld [vmem:[%s452_s3 + $0x8] sm:$0xff]   ;;  %vm147_vm7 = vcmask 261120  }
   0x2   :  { %v48_v2 = vsel %vm46_vm0, %v29_v1, 0  ;;  %v341_v3 = vld [vmem:[%s451_s0] sm:$0xff]   ;;  %323 = vmatprep.subr.bf16.mxu1 %v362_v0  ;;  %327 = vmatprep.mubr.msk.bf16.mxu1 %vm363_vm1, %v362_v0  ;;  %v345_v43 = vld [vmem:[%s454_s5 + $0x8] sm:$0xff]  }
   0x3   :  { %318 = vmatpush3.bf16.msra.mxu0 %v48_v2  ;;  %v342_v4 = vld [vmem:[%s452_s3] sm:$0xff]  }
   0x4   :  { %331 = vmatprep.subr.bf16.mxu0 %v362_v0  ;;  %324 = vmatpush3.bf16.msra.mxu1 %v342_v4  ;;  %v298_v6 = vld [vmem:[%s453_s2] ss:$0 sm:$0xff] }
   0x5   :  { %325 = vmatprep.subr.bf16.mxu1 %v362_v0  ;;  %v344_v42 = vld [vmem:[%s454_s5] sm:$0xff]  }
   0x6   :  { %320 = vmatmul.mubr.msk.bf16.vlgmr.msra.gmra.mrb[0].mxu0 %vm42_vm2, %v341_v3  ;;  %v301_v44 = vld [vmem:[%s455_s4] ss:$0 sm:$0xff] }
   0x7   :  { %335 = vmatprep.mubr.msk.bf16.mxu0 %vm363_vm1, %v362_v0  ;;  %332 = vmatpush3.bf16.msra.mxu0 %v344_v42 }
   0x8   :  { %326 = vmatpush3.bf16.msra.mxu1 %v343_v5  ;;  %333 = vmatprep.subr.bf16.mxu0 %v362_v0 }
   0xb   :  { %334 = vmatpush3.bf16.msra.mxu0 %v345_v43 }
  0xd9   :  { %v84_v7 = vpop.f32.mrb[0].mxu0 }
  0xda   :  { %v85_v8 = vadd.f32 %v298_v6, %v84_v7  ;;  %v321_v9 = vpop.f32.mrb[1].mxu0 }
  0xdb   :  { %v87_v10 = vpop.f32.mrb[2].mxu0 }
  0xdc   :  { %v91_v11 = vmul.f32 20.0, %v85_v8  ;;  %v88_v12 = vadd.f32 %v298_v6, %v87_v10  ;;  %v322_v13 = vpop.f32.mrb[3].mxu0 }
  0xde   :  { %v93_v14 = vmin.f32 %v91_v11, 20.0  ;;  %v92_v15 = vmul.f32 20.0, %v88_v12  ;;  %vm99_vm5 = vcmp.gt.f32.partialorder %v91_v11, 20.0 }
  0xe0   :  { %v95_v16 = vmul.f32 1.442695, %v93_v14  ;;  %v94_v17 = vmin.f32 %v92_v15, 20.0  ;;  %vm100_vm6 = vcmp.gt.f32.partialorder %v92_v15, 20.0 }
  0xe2   :  { %346 = vpow2.f32 %v95_v16  ;;  %v97_v18 = vmul.f32 1.442695, %v94_v17  ;;  %v305_v16 = vld [vmem:[%s456_s6] ss:$0 sm:$0xff] }
  0xe4   :  { %348 = vpow2.f32 %v97_v18 }
  0xec   :  { %v347_v19 = vpop.eup %346 }
  0xed   :  { %v101_v20 = vadd.f32 1.0, %v347_v19  ;;  %v104_v23 = vmul.f32 -0.5, %v347_v19  ;;  %v107_v26 = vand.u32 2147483647, %v347_v19 }
  0xee   :  { %v349_v21 = vpop.eup %348 }
  0xef   :  { %350 = vlog2.f32 %v101_v20  ;;  %v110_v22 = vadd.f32 1.0, %v349_v21  ;;  %v113_v24 = vmul.f32 -0.5, %v349_v21  ;;  %v105_v25 = vadd.f32 1.0, %v104_v23 }
  0xf0   :  { %v116_v29 = vand.u32 2147483647, %v349_v21  ;;  %vm108_vm3 = vcmp.lt.f32.partialorder %v107_v26, 0.0004427343 }
  0xf1   :  { %352 = vlog2.f32 %v110_v22  ;;  %v114_v27 = vadd.f32 1.0, %v113_v24  ;;  %v106_v31 = vmul.f32 %v347_v19, %v105_v25 }
  0xf2   :  { %vm117_vm4 = vcmp.lt.f32.partialorder %v116_v29, 0.0004427343 }
  0xf3   :  { %v115_v35 = vmul.f32 %v349_v21, %v114_v27 }
  0xf9   :  { %v351_v28 = vpop.eup %350 }
  0xfa   :  { %v103_v30 = vmul.f32 0.6931472, %v351_v28 }
  0xfb   :  { %v353_v32 = vpop.eup %352 }
  0xfc   :  { %v109_v33 = vsel %vm108_vm3, %v106_v31, %v103_v30  ;;  %v112_v34 = vmul.f32 0.6931472, %v353_v32 }
  0xfd   :  { %v119_v36 = vmul.f32 0.05, %v109_v33 }
  0xfe   :  { %v118_v37 = vsel %vm117_vm4, %v115_v35, %v112_v34 }
  0xff   :  { %v120_v38 = vmul.f32 0.05, %v118_v37  ;;  %v121_v39 = vsel %vm99_vm5, %v85_v8, %v119_v36 }
 0x101   :  { %v122_v40 = vsel %vm100_vm6, %v88_v12, %v120_v38 }
 0x102   :  { %v128_v41 = vpack.c.bf16 %v122_v40, %v121_v39 }
 0x104   :  { %328 = vmatmul.mubr.msk.bf16.vlgmr.msra.gmra.mrb[0].mxu1 %vm147_vm7, %v128_v41 }
 0x1d7   :  { %v185_v45 = vpop.f32.mrb[0].mxu1 }
 0x1d8   :  { %v186_v46 = vadd.f32 %v301_v44, %v185_v45  ;;  %v329_v47 = vpop.f32.mrb[1].mxu1 }
 0x1d9   :  { %v188_v48 = vpop.f32.mrb[2].mxu1 }
 0x1da   :  { %v192_v49 = vmul.f32 20.0, %v186_v46  ;;  %v189_v50 = vadd.f32 %v301_v44, %v188_v48  ;;  %v330_v51 = vpop.f32.mrb[3].mxu1 }
 0x1dc   :  { %v194_v52 = vmin.f32 %v192_v49, 20.0  ;;  %v193_v53 = vmul.f32 20.0, %v189_v50  ;;  %vm200_vm10 = vcmp.gt.f32.partialorder %v192_v49, 20.0 }
 0x1de   :  { %v196_v54 = vmul.f32 1.442695, %v194_v52  ;;  %v195_v55 = vmin.f32 %v193_v53, 20.0  ;;  %vm201_vm11 = vcmp.gt.f32.partialorder %v193_v53, 20.0 }
 0x1e0   :  { %354 = vpow2.f32 %v196_v54  ;;  %v198_v56 = vmul.f32 1.442695, %v195_v55 }
 0x1e2   :  { %356 = vpow2.f32 %v198_v56 }
 0x1ea   :  { %v355_v57 = vpop.eup %354 }
 0x1eb   :  { %v202_v58 = vadd.f32 1.0, %v355_v57  ;;  %v205_v61 = vmul.f32 -0.5, %v355_v57  ;;  %v208_v0 = vand.u32 2147483647, %v355_v57 }
 0x1ec   :  { %v357_v59 = vpop.eup %356 }
 0x1ed   :  { %358 = vlog2.f32 %v202_v58  ;;  %v211_v60 = vadd.f32 1.0, %v357_v59  ;;  %v214_v62 = vmul.f32 -0.5, %v357_v59  ;;  %v206_v63 = vadd.f32 1.0, %v205_v61 }
 0x1ee   :  { %v217_v3 = vand.u32 2147483647, %v357_v59  ;;  %vm209_vm8 = vcmp.lt.f32.partialorder %v208_v0, 0.0004427343 }
 0x1ef   :  { %360 = vlog2.f32 %v211_v60  ;;  %v215_v1 = vadd.f32 1.0, %v214_v62  ;;  %v207_v5 = vmul.f32 %v355_v57, %v206_v63 }
 0x1f0   :  { %vm218_vm9 = vcmp.lt.f32.partialorder %v217_v3, 0.0004427343 }
 0x1f1   :  { %v216_v9 = vmul.f32 %v357_v59, %v215_v1 }
 0x1f7   :  { %v359_v2 = vpop.eup %358 }
 0x1f8   :  { %v204_v4 = vmul.f32 0.6931472, %v359_v2 }
 0x1f9   :  { %v361_v6 = vpop.eup %360 }
 0x1fa   :  { %v210_v7 = vsel %vm209_vm8, %v207_v5, %v204_v4  ;;  %v213_v8 = vmul.f32 0.6931472, %v361_v6 }
 0x1fb   :  { %v220_v10 = vmul.f32 0.05, %v210_v7 }
 0x1fc   :  { %v219_v11 = vsel %vm218_vm9, %v216_v9, %v213_v8 }
 0x1fd   :  { %v221_v12 = vmul.f32 0.05, %v219_v11  ;;  %v222_v13 = vsel %vm200_vm10, %v186_v46, %v220_v10 }
 0x1ff   :  { %v223_v14 = vsel %vm201_vm11, %v189_v50, %v221_v12 }
 0x200   :  { %v229_v15 = vpack.c.bf16 %v223_v14, %v222_v13 }
 0x202   :  { %336 = vmatmul.mubr.msk.bf16.vlgmr.msra.gmra.mrb[4].mxu0 %vm147_vm7, %v229_v15 }
 0x2d5   :  { %v285_v17 = vpop.f32.mrb[4].mxu0 }
 0x2d6   :  { %v286_v18 = vadd.f32 %v305_v16, %v285_v17  ;;  %v337_v19 = vpop.f32.mrb[5].mxu0 }
 0x2d7   :  { %v288_v20 = vpop.f32.mrb[6].mxu0 }
 0x2d8   :  { %292 = vst.msk [vmem:[%s457_s7] sm:$0xff] %vm42_vm2, %v286_v18  ;;  %v289_v21 = vadd.f32 %v305_v16, %v288_v20  ;;  %v338_v22 = vpop.f32.mrb[7].mxu0 }
 0x2da   :  { %293 = vst.msk [vmem:[%s457_s7 + $0x8] sm:$0xff] %vm42_vm2, %v289_v21 }

</bundles_post_ra>
